<compile_context>
chip_gen: v5e
topology: v5e:2x2
jax: 0.10.0
libtpu: 0.0.40
codegen_flags: <defaults>
</compile_context>

<pallas_src>
import functools

import jax
import jax.numpy as jnp
from jax import lax
from jax.experimental import pallas as pl
from jax.experimental.pallas import tpu as pltpu

_LANE = 128


def _round_up(n, m):
    return ((n + m - 1) // m) * m


def _vmem_capacity_bytes():
    """Physical per-core VMEM, with a conservative (v7x) fallback."""
    try:
        info = pltpu.get_tpu_info()
        for name in ("vmem_capacity_bytes", "vmem_size_bytes", "vmem_bytes"):
            v = getattr(info, name, None)
            if v:
                return int(v)
    except Exception:
        pass
    return 64 * 1024 * 1024  # v7x per-TC VMEM (smallest current generation)


def _vmem_estimate(tm, tk, d_in_p, nk, x_bytes, w_bytes):
    """Rough VMEM footprint (bytes) of one pipelined step."""
    wbuf = 1 if nk == 1 else 2                            # weights single-buffered when resident
    weights = wbuf * (2 * d_in_p * tk + tk) * w_bytes     # w1 chunk + w2 chunk + b1 chunk
    consts = 3 * d_in_p * 4                               # b2 / gamma / beta (single buffer)
    io = 2 * (tm * d_in_p * x_bytes) * 2                  # x tile + out tile, double-buffered
    acc = tm * d_in_p * 4                                 # f32 accumulator scratch
    interm = tm * (2 * d_in_p * 4 + tk * (4 + w_bytes))   # LN temps + h1 + matmul cast
    return weights + consts + io + acc + interm


def _ffn_kernel(x_ref, w1_ref, b1_ref, w2_ref, b2_ref, g_ref, be_ref,
                o_ref, acc_ref, *, d_in, approx_gelu):
    k = pl.program_id(1)
    nk = pl.num_programs(1)

    x = x_ref[...].astype(jnp.float32)                    # (tm, d_in_p)
    d_in_p = x.shape[-1]
    inv_d = 1.0 / d_in

    # ---- LayerNorm (pre-norm), eps=1e-6, biased variance (torch semantics) ----
    # If d_in was lane-padded to d_in_p, the padded lanes of x/gamma/beta are
    # zero; reduce with the true d_in denominator and mask the centered values.
    mean = jnp.sum(x, axis=-1, keepdims=True) * inv_d
    xc = x - mean
    if d_in_p != d_in:
        lane = lax.broadcasted_iota(jnp.int32, x.shape, 1)
        xc = jnp.where(lane < d_in, xc, 0.0)
    var = jnp.sum(xc * xc, axis=-1, keepdims=True) * inv_d
    h = xc * lax.rsqrt(var + 1e-6)
    h = h * g_ref[...].astype(jnp.float32) + be_ref[...].astype(jnp.float32)

    # ---- Linear 1 over this d_hid chunk (MXU in weight dtype, f32 acc) + GELU ----
    h1 = jnp.dot(h.astype(w1_ref.dtype), w1_ref[...],
                 preferred_element_type=jnp.float32)
    h1 = h1 + b1_ref[...].astype(jnp.float32)
    if approx_gelu:
        # tanh approximation rides the EUP slot (cheap) but deviates from torch's default.
        h1 = 0.5 * h1 * (1.0 + jnp.tanh(0.7978845608028654
                                        * (h1 + 0.044715 * h1 * h1 * h1)))
    else:
        # exact erf GELU == torch.nn.functional.gelu default
        h1 = 0.5 * h1 * (1.0 + lax.erf(h1 * 0.7071067811865476))

    # ---- Linear 2: partial contribution of this d_hid chunk ----
    part = jnp.dot(h1.astype(w2_ref.dtype), w2_ref[...],
                   preferred_element_type=jnp.float32)

    @pl.when(k == 0)
    def _():
        # Residual (pre-norm input) + output bias, added exactly once.  The
        # fresh re-read of x keeps the f32 copy's live range short.
        acc_ref[...] = (x_ref[...].astype(jnp.float32)
                        + b2_ref[...].astype(jnp.float32))

    acc_ref[...] += part

    @pl.when(k == nk - 1)
    def _():
        o_ref[...] = acc_ref[...].astype(o_ref.dtype)


def positionwise_ffn(x, w1, b1, w2, b2, gamma, beta, *,
                     tm=512, tk=None, vmem_limit_bytes=None, approx_gelu=False):
    """Pre-norm position-wise FFN.  x: [N, d_in] -> [N, d_in].

    Weights follow the x @ w layout: w1 [d_in, d_hid], w2 [d_hid, d_in];
    biases / LayerNorm params broadcast over rows.  Weights may be f32 or
    bf16 — bf16 is the MXU fast path on v6e/v7x (f32 accumulation is kept).
    """
    N, d_in = x.shape
    d_hid = w1.shape[1]

    x_bytes = jnp.dtype(x.dtype).itemsize
    w_bytes = jnp.dtype(w1.dtype).itemsize
    sub = {4: 8, 2: 16, 1: 32}.get(x_bytes, 8)       # dtype-aware sublane multiple

    # Lane-dense channel dims (no-op for production sizes already % 128 == 0).
    d_in_p = _round_up(d_in, _LANE)
    d_hid_p0 = _round_up(d_hid, _LANE)

    # Row tile: as tall as useful, rounded to the dtype's sublane multiple.
    tm_eff = max(sub, min(_round_up(tm, sub), _round_up(N, sub)))

    # Generation-aware VMEM budget with headroom over physical capacity.
    cap = _vmem_capacity_bytes()
    if cap < (32 << 20):
        cap = 64 << 20
    budget = int(cap * 0.85)

    def est(tm_, tk_):
        nk_ = -(-d_hid_p0 // tk_)
        return _vmem_estimate(tm_, tk_, d_in_p, nk_, x_bytes, w_bytes)

    if tk is not None:
        tk_eff = max(_LANE, min(_round_up(tk, _LANE), d_hid_p0))
    else:
        # Stream d_hid in chunks only when fully-resident weights don't fit.
        tk_eff = d_hid_p0
        while tk_eff > 512 and est(tm_eff, tk_eff) > budget:
            tk_eff = max(512, _round_up(tk_eff // 2, _LANE))
    while tm_eff > 2 * sub and est(tm_eff, tk_eff) > budget:
        tm_eff = max(sub, _round_up(tm_eff // 2, sub))

    d_hid_p = _round_up(d_hid_p0, tk_eff)            # extra cols are zero => harmless
    nk = d_hid_p // tk_eff

    if vmem_limit_bytes is None:
        vmem_limit_bytes = int(min(budget,
                                   max(2 * est(tm_eff, tk_eff), 32 * 1024 * 1024)))

    # ---- Zero-pad operands to lane-dense shapes (kernel masks the LN stats). ----
    def _pad2(a, rows, cols):
        pr, pc = rows - a.shape[0], cols - a.shape[1]
        return a if (pr == 0 and pc == 0) else jnp.pad(a, ((0, pr), (0, pc)))

    b1 = jnp.reshape(b1, (1, -1))
    b2 = jnp.reshape(b2, (1, -1))
    gamma = jnp.reshape(gamma, (1, -1))
    beta = jnp.reshape(beta, (1, -1))

    x_p = _pad2(x, N, d_in_p)        # NOTE: no row padding — ragged last block is masked by Pallas
    w1_p = _pad2(w1, d_in_p, d_hid_p)
    b1_p = _pad2(b1, 1, d_hid_p)
    w2_p = _pad2(w2, d_hid_p, d_in_p)
    b2_p = _pad2(b2, 1, d_in_p)
    g_p = _pad2(gamma, 1, d_in_p)
    be_p = _pad2(beta, 1, d_in_p)

    # Grid-invariant operands: single VMEM buffer.  Operands stepped over the
    # d_hid chunk axis keep default double-buffering (overlap DMA with MXU).
    resident = pl.Buffered(1)
    chunked = pl.Buffered(1) if nk == 1 else pl.Buffered(2)

    grid = (pl.cdiv(N, tm_eff), nk)
    kernel = functools.partial(_ffn_kernel, d_in=d_in, approx_gelu=approx_gelu)

    out = pl.pallas_call(
        kernel,
        out_shape=jax.ShapeDtypeStruct((N, d_in_p), x.dtype),
        grid_spec=pltpu.PrefetchScalarGridSpec(
            num_scalar_prefetch=0,
            grid=grid,
            in_specs=[
                pl.BlockSpec((tm_eff, d_in_p), lambda i, k: (i, 0)),      # x row tile
                pl.BlockSpec((d_in_p, tk_eff), lambda i, k: (0, k),
                             pipeline_mode=chunked),                      # w1 chunk
                pl.BlockSpec((1, tk_eff), lambda i, k: (0, k),
                             pipeline_mode=chunked),                      # b1 chunk
                pl.BlockSpec((tk_eff, d_in_p), lambda i, k: (k, 0),
                             pipeline_mode=chunked),                      # w2 chunk
                pl.BlockSpec((1, d_in_p), lambda i, k: (0, 0),
                             pipeline_mode=resident),                     # b2
                pl.BlockSpec((1, d_in_p), lambda i, k: (0, 0),
                             pipeline_mode=resident),                     # gamma
                pl.BlockSpec((1, d_in_p), lambda i, k: (0, 0),
                             pipeline_mode=resident),                     # beta
            ],
            out_specs=pl.BlockSpec((tm_eff, d_in_p), lambda i, k: (i, 0)),
            scratch_shapes=[pltpu.VMEM((tm_eff, d_in_p), jnp.float32)],
        ),
        compiler_params=pltpu.CompilerParams(
            dimension_semantics=("parallel", "arbitrary"),
            vmem_limit_bytes=vmem_limit_bytes,
        ),
    )(x_p, w1_p, b1_p, w2_p, b2_p, g_p, be_p)

    return out[:, :d_in] if d_in_p != d_in else out


def reference_ffn(x, w1, b1, w2, b2, gamma, beta):
    xf = x.astype(jnp.float32)
    mean = jnp.mean(xf, axis=-1, keepdims=True)
    var = jnp.mean((xf - mean) ** 2, axis=-1, keepdims=True)
    h = (xf - mean) * lax.rsqrt(var + 1e-6) * gamma.astype(jnp.float32) \
        + beta.astype(jnp.float32)
    h1 = h @ w1.astype(jnp.float32) + b1.astype(jnp.float32)
    h1 = 0.5 * h1 * (1.0 + lax.erf(h1 / jnp.sqrt(2.0)))
    h2 = h1 @ w2.astype(jnp.float32) + b2.astype(jnp.float32)
    return (h2 + xf).astype(x.dtype)


if __name__ == "__main__":
    key = jax.random.PRNGKey(0)
    kx, k1, k2, k3, k4, kx2, kx3, k5, k6, k7, k8 = jax.random.split(key, 11)

    # --- Config A: module's small demo shapes (lane-padded path, masked LN) ---
    B, S, d_in, d_hid = 2, 8, 32, 64
    x = jax.random.normal(kx, (B, S, d_in), dtype=jnp.float32)
    w1 = jax.random.normal(k1, (d_in, d_hid), dtype=jnp.float32) * 0.1
    b1 = jax.random.normal(k2, (1, d_hid), dtype=jnp.float32) * 0.1
    w2 = jax.random.normal(k3, (d_hid, d_in), dtype=jnp.float32) * 0.1
    b2 = jax.random.normal(k4, (1, d_in), dtype=jnp.float32) * 0.1
    gamma = jnp.ones((1, d_in), jnp.float32)
    beta = jnp.zeros((1, d_in), jnp.float32)

    x2d = x.reshape(B * S, d_in)
    ref = reference_ffn(x2d, w1, b1, w2, b2, gamma, beta)

    # Test 1: f32 weights
    out = jax.block_until_ready(positionwise_ffn(x2d, w1, b1, w2, b2, gamma, beta))
    assert out.shape == (B * S, d_in)
    assert jnp.allclose(out, ref, atol=1e-4, rtol=1e-4), "f32 mismatch vs reference"

    # Test 2: bf16 weights (native-dtype MXU path), looser tolerance
    out_bf = jax.block_until_ready(positionwise_ffn(
        x2d, w1.astype(jnp.bfloat16), b1.astype(jnp.bfloat16),
        w2.astype(jnp.bfloat16), b2.astype(jnp.bfloat16), gamma, beta))
    assert jnp.allclose(out_bf, ref, atol=5e-2, rtol=5e-2), "bf16 mismatch vs reference"

    # Test 3: ragged N (75 rows, tile 32) — partial last row block, no pad copy
    B2, S2 = 3, 25
    x_r = jax.random.normal(kx2, (B2 * S2, d_in), dtype=jnp.float32)
    out_r = jax.block_until_ready(
        positionwise_ffn(x_r, w1, b1, w2, b2, gamma, beta, tm=32))
    ref_r = reference_ffn(x_r, w1, b1, w2, b2, gamma, beta)
    assert out_r.shape == (B2 * S2, d_in)
    assert jnp.allclose(out_r, ref_r, atol=1e-4, rtol=1e-4), "ragged mismatch vs reference"

    # --- Config B: lane-dense dims + forced d_hid chunking (nk=2 accumulator path) ---
    d_in2, d_hid2, N2 = 128, 256, 64
    xb = jax.random.normal(kx3, (N2, d_in2), dtype=jnp.float32)
    w1b = jax.random.normal(k5, (d_in2, d_hid2), dtype=jnp.float32) * 0.05
    b1b = jax.random.normal(k6, (1, d_hid2), dtype=jnp.float32) * 0.05
    w2b = jax.random.normal(k7, (d_hid2, d_in2), dtype=jnp.float32) * 0.05
    b2b = jax.random.normal(k8, (1, d_in2), dtype=jnp.float32) * 0.05
    gamma2 = jnp.ones((1, d_in2), jnp.float32)
    beta2 = jnp.zeros((1, d_in2), jnp.float32)
    out_b = jax.block_until_ready(positionwise_ffn(
        xb, w1b, b1b, w2b, b2b, gamma2, beta2, tk=128))
    ref_b = reference_ffn(xb, w1b, b1b, w2b, b2b, gamma2, beta2)
    assert jnp.allclose(out_b, ref_b, atol=1e-4, rtol=1e-4), "chunked mismatch vs reference"

    print("KERNEL_OK")
</pallas_src>

<mosaic_0001>
module attributes {stable_mosaic.version = 11 : i64} {
  func.func @_ffn_kernel(%arg0: i32, %arg1: i32, %arg2: memref<16x128xf32, #tpu.memory_space<vmem>>, %arg3: memref<128x128xf32, #tpu.memory_space<vmem>>, %arg4: memref<1x128xf32, #tpu.memory_space<vmem>>, %arg5: memref<128x128xf32, #tpu.memory_space<vmem>>, %arg6: memref<1x128xf32, #tpu.memory_space<vmem>>, %arg7: memref<1x128xf32, #tpu.memory_space<vmem>>, %arg8: memref<1x128xf32, #tpu.memory_space<vmem>>, %arg9: memref<16x128xf32, #tpu.memory_space<vmem>>, %arg10: memref<16x128xf32, #tpu.memory_space<vmem>>) attributes {dimension_semantics = [#tpu.dimension_semantics<parallel>, #tpu.dimension_semantics<arbitrary>], iteration_bounds = array<i64: 1, 1>, scalar_prefetch = 0 : i64, scratch_operands = 1 : i64, tpu.core_type = #tpu.core_type<tc>, window_params = [{transform_indices = @transform_0, window_bounds = array<i64: 16, 128>}, {pipeline_mode = #tpu.pipeline_mode<synchronous>, transform_indices = @transform_1, window_bounds = array<i64: 128, 128>}, {pipeline_mode = #tpu.pipeline_mode<synchronous>, transform_indices = @transform_2, window_bounds = array<i64: 1, 128>}, {pipeline_mode = #tpu.pipeline_mode<synchronous>, transform_indices = @transform_3, window_bounds = array<i64: 128, 128>}, {pipeline_mode = #tpu.pipeline_mode<synchronous>, transform_indices = @transform_4, window_bounds = array<i64: 1, 128>}, {pipeline_mode = #tpu.pipeline_mode<synchronous>, transform_indices = @transform_5, window_bounds = array<i64: 1, 128>}, {pipeline_mode = #tpu.pipeline_mode<synchronous>, transform_indices = @transform_6, window_bounds = array<i64: 1, 128>}, {transform_indices = @transform_7, window_bounds = array<i64: 16, 128>}]} {
    %c0 = arith.constant 0 : index
    %c0_0 = arith.constant 0 : index
    %0 = vector.load %arg2[%c0, %c0_0] : memref<16x128xf32, #tpu.memory_space<vmem>>, vector<16x128xf32>
    %cst = arith.constant dense<0.000000e+00> : vector<16xf32>
    %1 = vector.multi_reduction <add>, %0, %cst [1] : vector<16x128xf32> to vector<16xf32>
    %2 = vector.shape_cast %1 : vector<16xf32> to vector<16x1xf32>
    %cst_1 = arith.constant 3.125000e-02 : f32
    %3 = vector.broadcast %cst_1 : f32 to vector<16x1xf32>
    %4 = arith.mulf %2, %3 : vector<16x1xf32>
    %5 = vector.broadcast %4 : vector<16x1xf32> to vector<16x128xf32>
    %6 = arith.subf %0, %5 : vector<16x128xf32>
    %7 = tpu.iota {dimensions = array<i32: 1>} : vector<16x128xi32>
    %c32_i32 = arith.constant 32 : i32
    %8 = vector.broadcast %c32_i32 : i32 to vector<16x128xi32>
    %9 = arith.cmpi slt, %7, %8 : vector<16x128xi32>
    %cst_2 = arith.constant 0.000000e+00 : f32
    %10 = vector.broadcast %cst_2 : f32 to vector<16x128xf32>
    %11 = arith.select %9, %6, %10 : vector<16x128xi1>, vector<16x128xf32>
    %12 = arith.mulf %11, %11 : vector<16x128xf32>
    %cst_3 = arith.constant dense<0.000000e+00> : vector<16xf32>
    %13 = vector.multi_reduction <add>, %12, %cst_3 [1] : vector<16x128xf32> to vector<16xf32>
    %14 = vector.shape_cast %13 : vector<16xf32> to vector<16x1xf32>
    %cst_4 = arith.constant 3.125000e-02 : f32
    %15 = vector.broadcast %cst_4 : f32 to vector<16x1xf32>
    %16 = arith.mulf %14, %15 : vector<16x1xf32>
    %cst_5 = arith.constant 9.99999997E-7 : f32
    %17 = vector.broadcast %cst_5 : f32 to vector<16x1xf32>
    %18 = arith.addf %16, %17 : vector<16x1xf32>
    %19 = math.rsqrt %18 : vector<16x1xf32>
    %20 = vector.broadcast %19 : vector<16x1xf32> to vector<16x128xf32>
    %21 = arith.mulf %11, %20 : vector<16x128xf32>
    %c0_6 = arith.constant 0 : index
    %c0_7 = arith.constant 0 : index
    %22 = vector.load %arg7[%c0_6, %c0_7] : memref<1x128xf32, #tpu.memory_space<vmem>>, vector<1x128xf32>
    %23 = vector.broadcast %22 : vector<1x128xf32> to vector<16x128xf32>
    %24 = arith.mulf %21, %23 : vector<16x128xf32>
    %c0_8 = arith.constant 0 : index
    %c0_9 = arith.constant 0 : index
    %25 = vector.load %arg8[%c0_8, %c0_9] : memref<1x128xf32, #tpu.memory_space<vmem>>, vector<1x128xf32>
    %26 = vector.broadcast %25 : vector<1x128xf32> to vector<16x128xf32>
    %27 = arith.addf %24, %26 : vector<16x128xf32>
    %c0_10 = arith.constant 0 : index
    %c0_11 = arith.constant 0 : index
    %28 = vector.load %arg3[%c0_10, %c0_11] : memref<128x128xf32, #tpu.memory_space<vmem>>, vector<128x128xf32>
    %cst_12 = arith.constant dense<0.000000e+00> : vector<16x128xf32>
    %29 = tpu.matmul %27, %28, %cst_12 {dimension_numbers = #tpu.dot_dimension_numbers<[1], [0], [0], [1], [0, 0, 1, 1], [], []>} : vector<16x128xf32>, vector<128x128xf32>, vector<16x128xf32> -> vector<16x128xf32>
    %c0_13 = arith.constant 0 : index
    %c0_14 = arith.constant 0 : index
    %30 = vector.load %arg4[%c0_13, %c0_14] : memref<1x128xf32, #tpu.memory_space<vmem>>, vector<1x128xf32>
    %31 = vector.broadcast %30 : vector<1x128xf32> to vector<16x128xf32>
    %32 = arith.addf %29, %31 : vector<16x128xf32>
    %cst_15 = arith.constant 5.000000e-01 : f32
    %33 = vector.broadcast %cst_15 : f32 to vector<16x128xf32>
    %34 = arith.mulf %33, %32 : vector<16x128xf32>
    %cst_16 = arith.constant 0.707106769 : f32
    %35 = vector.broadcast %cst_16 : f32 to vector<16x128xf32>
    %36 = arith.mulf %32, %35 : vector<16x128xf32>
    %37 = math.erf %36 : vector<16x128xf32>
    %cst_17 = arith.constant 1.000000e+00 : f32
    %38 = vector.broadcast %cst_17 : f32 to vector<16x128xf32>
    %39 = arith.addf %38, %37 : vector<16x128xf32>
    %40 = arith.mulf %34, %39 : vector<16x128xf32>
    %c0_18 = arith.constant 0 : index
    %c0_19 = arith.constant 0 : index
    %41 = vector.load %arg5[%c0_18, %c0_19] : memref<128x128xf32, #tpu.memory_space<vmem>>, vector<128x128xf32>
    %cst_20 = arith.constant dense<0.000000e+00> : vector<16x128xf32>
    %42 = tpu.matmul %40, %41, %cst_20 {dimension_numbers = #tpu.dot_dimension_numbers<[1], [0], [0], [1], [0, 0, 1, 1], [], []>} : vector<16x128xf32>, vector<128x128xf32>, vector<16x128xf32> -> vector<16x128xf32>
    %c0_i32 = arith.constant 0 : i32
    %43 = arith.cmpi eq, %arg1, %c0_i32 : i32
    %44 = arith.extui %43 : i1 to i32
    %c0_i32_21 = arith.constant 0 : i32
    %45 = arith.cmpi ne, %44, %c0_i32_21 : i32
    scf.if %45 {
      %c0_28 = arith.constant 0 : index
      %c0_29 = arith.constant 0 : index
      %52 = vector.load %arg2[%c0_28, %c0_29] : memref<16x128xf32, #tpu.memory_space<vmem>>, vector<16x128xf32>
      %c0_30 = arith.constant 0 : index
      %c0_31 = arith.constant 0 : index
      %53 = vector.load %arg6[%c0_30, %c0_31] : memref<1x128xf32, #tpu.memory_space<vmem>>, vector<1x128xf32>
      %54 = vector.broadcast %53 : vector<1x128xf32> to vector<16x128xf32>
      %55 = arith.addf %52, %54 : vector<16x128xf32>
      %c0_32 = arith.constant 0 : index
      %c0_33 = arith.constant 0 : index
      %56 = vector.load %arg10[%c0_32, %c0_33] : memref<16x128xf32, #tpu.memory_space<vmem>>, vector<16x128xf32>
      tpu.vector_store %arg10[%c0_32, %c0_33], %55 {strides = array<i32>} : memref<16x128xf32, #tpu.memory_space<vmem>>, vector<16x128xf32>,
    } else {
    }
    %c0_22 = arith.constant 0 : index
    %c0_23 = arith.constant 0 : index
    %46 = vector.load %arg10[%c0_22, %c0_23] : memref<16x128xf32, #tpu.memory_space<vmem>>, vector<16x128xf32>
    %47 = arith.addf %46, %42 : vector<16x128xf32>
    %c0_24 = arith.constant 0 : index
    %c0_25 = arith.constant 0 : index
    %48 = vector.load %arg10[%c0_24, %c0_25] : memref<16x128xf32, #tpu.memory_space<vmem>>, vector<16x128xf32>
    tpu.vector_store %arg10[%c0_24, %c0_25], %47 {strides = array<i32>} : memref<16x128xf32, #tpu.memory_space<vmem>>, vector<16x128xf32>,
    %c0_i32_26 = arith.constant 0 : i32
    %49 = arith.cmpi eq, %arg1, %c0_i32_26 : i32
    %50 = arith.extui %49 : i1 to i32
    %c0_i32_27 = arith.constant 0 : i32
    %51 = arith.cmpi ne, %50, %c0_i32_27 : i32
    scf.if %51 {
      %c0_28 = arith.constant 0 : index
      %c0_29 = arith.constant 0 : index
      %52 = vector.load %arg10[%c0_28, %c0_29] : memref<16x128xf32, #tpu.memory_space<vmem>>, vector<16x128xf32>
      %c0_30 = arith.constant 0 : index
      %c0_31 = arith.constant 0 : index
      %53 = vector.load %arg9[%c0_30, %c0_31] : memref<16x128xf32, #tpu.memory_space<vmem>>, vector<16x128xf32>
      tpu.vector_store %arg9[%c0_30, %c0_31], %52 {strides = array<i32>} : memref<16x128xf32, #tpu.memory_space<vmem>>, vector<16x128xf32>,
    } else {
    }
    return
  }
  func.func @transform_0(%arg0: i32, %arg1: i32) -> (i32, i32) {
    %c0_i32 = arith.constant 0 : i32
    %c0_i32_0 = arith.constant 0 : i32
    return %arg0, %c0_i32 : i32, i32
  }
  func.func @transform_1(%arg0: i32, %arg1: i32) -> (i32, i32) {
    %c0_i32 = arith.constant 0 : i32
    %c0_i32_0 = arith.constant 0 : i32
    return %c0_i32, %arg1 : i32, i32
  }
  func.func @transform_2(%arg0: i32, %arg1: i32) -> (i32, i32) {
    %c0_i32 = arith.constant 0 : i32
    %c0_i32_0 = arith.constant 0 : i32
    return %c0_i32, %arg1 : i32, i32
  }
  func.func @transform_3(%arg0: i32, %arg1: i32) -> (i32, i32) {
    %c0_i32 = arith.constant 0 : i32
    %c0_i32_0 = arith.constant 0 : i32
    return %arg1, %c0_i32 : i32, i32
  }
  func.func @transform_4(%arg0: i32, %arg1: i32) -> (i32, i32) {
    %c0_i32 = arith.constant 0 : i32
    %c0_i32_0 = arith.constant 0 : i32
    %c0_i32_1 = arith.constant 0 : i32
    return %c0_i32, %c0_i32_0 : i32, i32
  }
  func.func @transform_5(%arg0: i32, %arg1: i32) -> (i32, i32) {
    %c0_i32 = arith.constant 0 : i32
    %c0_i32_0 = arith.constant 0 : i32
    %c0_i32_1 = arith.constant 0 : i32
    return %c0_i32, %c0_i32_0 : i32, i32
  }
  func.func @transform_6(%arg0: i32, %arg1: i32) -> (i32, i32) {
    %c0_i32 = arith.constant 0 : i32
    %c0_i32_0 = arith.constant 0 : i32
    %c0_i32_1 = arith.constant 0 : i32
    return %c0_i32, %c0_i32_0 : i32, i32
  }
  func.func @transform_7(%arg0: i32, %arg1: i32) -> (i32, i32) {
    %c0_i32 = arith.constant 0 : i32
    %c0_i32_0 = arith.constant 0 : i32
    return %arg0, %c0_i32 : i32, i32
  }
}

</mosaic_0001>

<bundles_post_ra>
// kernel: tpu_custom_call.1
= control target key start
LH: loop header
LB: loop body
LE: loop exit
PB: predicated region body
PF: predicated region fallthrough
CT: control target
= control target key end

     0   :  { %12 = vsyncpa [#allocation4], 0  ;;  %s636_s0 = inlined_call_operand.hbm [shape: f32[16,128], index: 0, kind: input, shape index: {}]   ;;  %s637_s1 = inlined_call_operand.hbm [shape: f32[128,128], index: 1, kind: input, shape index: {}]   ;;  %s638_s2 = inlined_call_operand.vmem [shape: f32[1,128], index: 2, kind: input, shape index: {}]   ;;  %s639_s3 = inlined_call_operand.hbm [shape: f32[128,128], index: 3, kind: input, shape index: {}]   ;;  %s640_s4 = inlined_call_operand.vmem [shape: f32[1,128], index: 4, kind: input, shape index: {}]   ;;  %s641_s5 = inlined_call_operand.vmem [shape: f32[1,128], index: 5, kind: input, shape index: {}]   ;;  %s642_s6 = inlined_call_operand.vmem [shape: f32[1,128], index: 6, kind: input, shape index: {}]   ;;  %s643_s7 = inlined_call_operand.hbm [shape: f32[16,128], index: 7, kind: output, shape index: {}]  }
   0x1   :  { %13 = vsyncpa [#allocation7], 0 }
   0x2   :  { %14 = vsyncpa [#allocation5], 0  ;;  %s32_s26 = sshll.u32 %s637_s1, 4  ;;  %s504_s27 = smov [#allocation6]   ;;  %s33_s26 = int_to_ptr.hbm [resolvable:$true] %s32_s26 }
   0x3   :  { %s34_s28 = sshll.u32 %s504_s27, 4  ;;  %s19_s8 = sshll.u32 %s636_s0, 4  ;;  %s35_s28 = int_to_ptr.vmem [resolvable:$true] %s34_s28  ;;  %s20_s8 = int_to_ptr.hbm [resolvable:$true] %s19_s8 }
   0x4   :  { %s505_s9 = smov 128   ;;  %s506_s10 = smov 8  }
   0x5   :  { %40 = dma.hbm_to_vmem [thread:$0]  %s33_s26, 2048, %s35_s28, [#allocation7], %s505_s9, %s505_s9, %s506_s10  }
   0x6   :  { %s507_s11 = smov [#allocation3]   ;;  %s47_s1 = sshll.u32 %s639_s3, 4  ;;  %s48_s1 = int_to_ptr.hbm [resolvable:$true] %s47_s1 }
   0x7   :  { %s21_s12 = sshll.u32 %s507_s11, 4  ;;  %s508_s0 = smov [#allocation8]   ;;  %s22_s12 = int_to_ptr.vmem [resolvable:$true] %s21_s12 }
   0x8   :  { %27 = dma.hbm_to_vmem [thread:$0]  %s20_s8, 256, %s22_s12, [#allocation4], %s505_s9, %s505_s9, %s506_s10  }
   0x9   :  { %s49_s15 = sshll.u32 %s508_s0, 4  ;;  %s50_s15 = int_to_ptr.vmem [resolvable:$true] %s49_s15 }
   0xa   :  { %55 = dma.hbm_to_vmem [thread:$0]  %s48_s1, 2048, %s50_s15, [#allocation7], %s505_s9, %s505_s9, %s506_s10  }
   0xb   :  { %498 = dma.done.wait [#allocation4], 256  }
   0xc   :  { %499 = vsyncadd [#allocation4], 4294967040 }
   0xd   :  { %500 = dma.done.wait [#allocation7], 4096  }
   0xe   :  { %501 = vsyncadd [#allocation7], 4294963200  ;;  %v568_v0 = vld [vmem:[#allocation3 + $0x8] sm:$0xff]  ;;  %v571_v1 = vld [vmem:[#allocation3] sm:$0xff]  ;;  %v84_v4 = vlaneseq  ;;  %s509_s20 = smov [#allocation9]   ;;  %s336_s24 = sshll.u32 %s643_s7, 4  ;;  %s337_s24 = int_to_ptr.hbm [resolvable:$true] %s336_s24 }
   0xf   :  { %78 = vadd.xlane.f32.xlu0 %v568_v0  ;;  %v148_v2 = vld [vmem:[#allocation6 + $0x78] sm:$0xff]  ;;  %v147_v3 = vld [vmem:[#allocation6 + $0x70] sm:$0xff]  ;;  %v146_v16 = vld [vmem:[#allocation6 + $0x68] sm:$0xff]  ;;  %s334_s21 = sshll.u32 %s509_s20, 4  ;;  %s335_s21 = int_to_ptr.vmem [resolvable:$true] %s334_s21 }
  0x10   :  { %352 = vmatpush.msra.mxu2 %v148_v2  ;;  %153 = vmatpush.msra.mxu0 %v148_v2  ;;  %v85_v5 = vand.u32 127, %v84_v4  ;;  %v145_v17 = vld [vmem:[#allocation6 + $0x60] sm:$0xff]  ;;  %v144_v18 = vld [vmem:[#allocation6 + $0x58] sm:$0xff]  ;;  %v143_v19 = vld [vmem:[#allocation6 + $0x50] sm:$0xff] }
  0x11   :  { %v142_v20 = vld [vmem:[#allocation6 + $0x48] sm:$0xff]  ;;  %v141_v21 = vld [vmem:[#allocation6 + $0x40] sm:$0xff]  ;;  %v140_v22 = vld [vmem:[#allocation6 + $0x38] sm:$0xff] }
  0x12   :  { %353 = vmatpush.msra.mxu2 %v147_v3  ;;  %154 = vmatpush.msra.mxu0 %v147_v3  ;;  %vm86_vm0 = vcmp.lt.s32.totalorder %v85_v5, 32  ;;  %v139_v23 = vld [vmem:[#allocation6 + $0x30] sm:$0xff]  ;;  %v138_v24 = vld [vmem:[#allocation6 + $0x28] sm:$0xff]  ;;  %v137_v25 = vld [vmem:[#allocation6 + $0x20] sm:$0xff] }
  0x13   :  { %v136_v26 = vld [vmem:[#allocation6 + $0x18] sm:$0xff]  ;;  %v135_v27 = vld [vmem:[#allocation6 + $0x10] sm:$0xff]  ;;  %v134_v28 = vld [vmem:[#allocation6 + $0x8] sm:$0xff] }
  0x14   :  { %354 = vmatpush.msra.mxu2 %v146_v16  ;;  %155 = vmatpush.msra.mxu0 %v146_v16  ;;  %v133_v29 = vld [vmem:[#allocation6] sm:$0xff]  ;;  %v390_v44 = vld [vmem:[%s641_s5] ss:$0 sm:$0xff]  ;;  %v279_v58 = vld [vmem:[#allocation8 + $0x78] sm:$0xff] }
  0x15   :  { %v391_v48 = vld [vmem:[%s642_s6] ss:$0 sm:$0xff]  ;;  %368 = vmatpush.msra.mxu3 %v279_v58  ;;  %280 = vmatpush.msra.mxu1 %v279_v58  ;;  %v277_v60 = vld [vmem:[#allocation8 + $0x68] sm:$0xff]  ;;  %v276_v61 = vld [vmem:[#allocation8 + $0x60] sm:$0xff] }
  0x16   :  { %355 = vmatpush.msra.mxu2 %v145_v17  ;;  %156 = vmatpush.msra.mxu0 %v145_v17  ;;  %v278_v59 = vld [vmem:[#allocation8 + $0x70] sm:$0xff]  ;;  %v275_v63 = vld [vmem:[#allocation8 + $0x58] sm:$0xff]  ;;  %v273_v4 = vld [vmem:[#allocation8 + $0x48] sm:$0xff] }
  0x17   :  { %76 = vadd.xlane.f32.xlu0 %v571_v1  ;;  %369 = vmatpush.msra.mxu3 %v278_v59  ;;  %v392_v62 = vld [vmem:[%s638_s2] ss:$0 sm:$0xff]  ;;  %v269_v16 = vld [vmem:[#allocation8 + $0x28] sm:$0xff] }
  0x18   :  { %356 = vmatpush.msra.mxu2 %v144_v18  ;;  %157 = vmatpush.msra.mxu0 %v144_v18  ;;  %v274_v2 = vld [vmem:[#allocation8 + $0x50] sm:$0xff] }
  0x19   :  { %281 = vmatpush.msra.mxu1 %v278_v59  ;;  %370 = vmatpush.msra.mxu3 %v277_v60 }
  0x1a   :  { %357 = vmatpush.msra.mxu2 %v143_v19  ;;  %158 = vmatpush.msra.mxu0 %v143_v19 }
  0x1b   :  { %282 = vmatpush.msra.mxu1 %v277_v60  ;;  %371 = vmatpush.msra.mxu3 %v276_v61 }
  0x1c   :  { %358 = vmatpush.msra.mxu2 %v142_v20  ;;  %159 = vmatpush.msra.mxu0 %v142_v20  ;;  %v268_v20 = vld [vmem:[#allocation8 + $0x20] sm:$0xff] }
  0x1d   :  { %283 = vmatpush.msra.mxu1 %v276_v61  ;;  %372 = vmatpush.msra.mxu3 %v275_v63 }
  0x1e   :  { %359 = vmatpush.msra.mxu2 %v141_v21  ;;  %160 = vmatpush.msra.mxu0 %v141_v21 }
  0x1f   :  { %284 = vmatpush.msra.mxu1 %v275_v63  ;;  %373 = vmatpush.msra.mxu3 %v274_v2 }
  0x20   :  { %360 = vmatpush.msra.mxu2 %v140_v22  ;;  %161 = vmatpush.msra.mxu0 %v140_v22 }
  0x21   :  { %285 = vmatpush.msra.mxu1 %v274_v2  ;;  %374 = vmatpush.msra.mxu3 %v273_v4 }
  0x22   :  { %361 = vmatpush.msra.mxu2 %v139_v23  ;;  %162 = vmatpush.msra.mxu0 %v139_v23 }
  0x23   :  { %286 = vmatpush.msra.mxu1 %v273_v4 }
  0x24   :  { %362 = vmatpush.msra.mxu2 %v138_v24  ;;  %163 = vmatpush.msra.mxu0 %v138_v24  ;;  %v267_v24 = vld [vmem:[#allocation8 + $0x18] sm:$0xff] }
  0x26   :  { %363 = vmatpush.msra.mxu2 %v137_v25  ;;  %164 = vmatpush.msra.mxu0 %v137_v25 }
  0x28   :  { %364 = vmatpush.msra.mxu2 %v136_v26  ;;  %165 = vmatpush.msra.mxu0 %v136_v26 }
  0x2a   :  { %365 = vmatpush.msra.mxu2 %v135_v27  ;;  %166 = vmatpush.msra.mxu0 %v135_v27 }
  0x2c   :  { %366 = vmatpush.msra.mxu2 %v134_v28  ;;  %167 = vmatpush.msra.mxu0 %v134_v28 }
  0x2e   :  { %367 = vmatpush.msra.mxu2 %v133_v29  ;;  %168 = vmatpush.msra.mxu0 %v133_v29  ;;  %v266_v29 = vld [vmem:[#allocation8 + $0x10] sm:$0xff] }
  0x82   :  { %v79_v6 = vpop.xlane.xlu0 %78 }
  0x83   :  { %v81_v7 = vmul.f32 0.03125, %v79_v6 }
  0x85   :  { %v83_v8 = vsub.f32 %v568_v0, %v81_v7  ;;  %v272_v7 = vld [vmem:[#allocation8 + $0x40] sm:$0xff] }
  0x86   :  { %375 = vmatpush.msra.mxu3 %v272_v7  ;;  %287 = vmatpush.msra.mxu1 %v272_v7 }
  0x87   :  { %v575_v9 = vsel %vm86_vm0, %v83_v8, 0.0 }
  0x88   :  { %v90_v10 = vmul.f32 %v575_v9, %v575_v9 }
  0x8a   :  { %93 = vadd.xlane.f32.xlu1 %v90_v10  ;;  %v77_v11 = vpop.xlane.xlu0 %76  ;;  %v271_v10 = vld [vmem:[#allocation8 + $0x38] sm:$0xff] }
  0x8b   :  { %v80_v12 = vmul.f32 0.03125, %v77_v11  ;;  %376 = vmatpush.msra.mxu3 %v271_v10  ;;  %288 = vmatpush.msra.mxu1 %v271_v10 }
  0x8d   :  { %v82_v13 = vsub.f32 %v571_v1, %v80_v12 }
  0x8f   :  { %v580_v14 = vsel %vm86_vm0, %v82_v13, 0.0  ;;  %v270_v13 = vld [vmem:[#allocation8 + $0x30] sm:$0xff] }
  0x90   :  { %v89_v15 = vmul.f32 %v580_v14, %v580_v14  ;;  %377 = vmatpush.msra.mxu3 %v270_v13  ;;  %289 = vmatpush.msra.mxu1 %v270_v13 }
  0x92   :  { %91 = vadd.xlane.f32.xlu1 %v89_v15  ;;  %378 = vmatpush.msra.mxu3 %v269_v16 }
  0x93   :  { %290 = vmatpush.msra.mxu1 %v269_v16 }
  0x94   :  { %379 = vmatpush.msra.mxu3 %v268_v20 }
  0x95   :  { %291 = vmatpush.msra.mxu1 %v268_v20 }
  0x96   :  { %380 = vmatpush.msra.mxu3 %v267_v24 }
  0x97   :  { %292 = vmatpush.msra.mxu1 %v267_v24 }
  0x98   :  { %381 = vmatpush.msra.mxu3 %v266_v29 }
  0x99   :  { %293 = vmatpush.msra.mxu1 %v266_v29 }
  0xfd   :  { %v94_v30 = vpop.xlane.xlu1 %93 }
  0xfe   :  { %v96_v31 = vmul.f32 0.03125, %v94_v30 }
 0x100   :  { %v98_v32 = vadd.f32 1e-06, %v96_v31 }
 0x102   :  { %394 = vrsqrt.f32 %v98_v32  ;;  %vm115_vm2 = vweird.f32 %v98_v32 }
 0x105   :  { %v92_v33 = vpop.xlane.xlu1 %91 }
 0x106   :  { %v95_v34 = vmul.f32 0.03125, %v92_v33 }
 0x108   :  { %v395_v35 = vpop.eup %394  ;;  %v97_v36 = vadd.f32 1e-06, %v95_v34  ;;  %v265_v34 = vld [vmem:[#allocation8 + $0x8] sm:$0xff] }
 0x109   :  { %v110_v37 = vmul.f32 %v395_v35, %v98_v32  ;;  %vm116_vm1 = vweird.f32 %v395_v35  ;;  %382 = vmatpush.msra.mxu3 %v265_v34  ;;  %294 = vmatpush.msra.mxu1 %v265_v34 }
 0x10a   :  { %396 = vrsqrt.f32 %v97_v36  ;;  %vm117_vm3 = vmor %vm115_vm2, %vm116_vm1  ;;  %vm105_vm5 = vweird.f32 %v97_v36 }
 0x10b   :  { %v111_v38 = vmul.f32 %v395_v35, %v110_v37 }
 0x10d   :  { %v112_v39 = vmul.f32 0.5, %v111_v38  ;;  %v264_v38 = vld [vmem:[#allocation8] sm:$0xff] }
 0x10e   :  { %383 = vmatpush.msra.mxu3 %v264_v38  ;;  %295 = vmatpush.msra.mxu1 %v264_v38 }
 0x10f   :  { %v113_v40 = vsub.f32 1.5, %v112_v39 }
 0x110   :  { %v397_v41 = vpop.eup %396 }
 0x111   :  { %v114_v42 = vmul.f32 %v395_v35, %v113_v40  ;;  %v100_v43 = vmul.f32 %v397_v41, %v97_v36  ;;  %vm106_vm4 = vweird.f32 %v397_v41 }
 0x112   :  { %vm107_vm6 = vmor %vm105_vm5, %vm106_vm4 }
 0x113   :  { %v101_v45 = vmul.f32 %v397_v41, %v100_v43  ;;  %v118_v46 = vsel %vm117_vm3, %v395_v35, %v114_v42 }
 0x114   :  { %v120_v47 = vmul.f32 %v118_v46, %v575_v9 }
 0x115   :  { %v102_v49 = vmul.f32 0.5, %v101_v45 }
 0x116   :  { %v126_v50 = vmul.f32 %v390_v44, %v120_v47 }
 0x117   :  { %v103_v51 = vsub.f32 1.5, %v102_v49 }
 0x118   :  { %v132_v52 = vadd.f32 %v391_v48, %v126_v50 }
 0x119   :  { %v104_v53 = vmul.f32 %v397_v41, %v103_v51 }
 0x11a   :  { %172 = vmatmul.f32.vlgmr.msra.gmra.mxu2 %v132_v52 }
 0x11b   :  { %v108_v54 = vsel %vm107_vm6, %v397_v41, %v104_v53 }
 0x11c   :  { %v119_v55 = vmul.f32 %v108_v54, %v580_v14 }
 0x11e   :  { %v125_v56 = vmul.f32 %v390_v44, %v119_v55 }
 0x120   :  { %v131_v57 = vadd.f32 %v391_v48, %v125_v56 }
 0x122   :  { %169 = vmatmul.f32.vlgmr.msra.gmra.mxu0 %v131_v57 }
 0x19d   :  { %v173_v3 = vpop.f32.mrf.mxu2 }
 0x19e   :  { %v595_v5 = vadd.f32 %v392_v62, %v173_v3 }
 0x19f   :  { %v170_v6 = vpop.f32.mrf.mxu0 }
 0x1a0   :  { %v598_v8 = vmul.f32 0.70710677, %v595_v5  ;;  %v600_v9 = vadd.f32 %v392_v62, %v170_v6 }
 0x1a2   :  { %v220_v11 = vmul.f32 %v598_v8, %v598_v8  ;;  %v605_v12 = vmul.f32 0.70710677, %v600_v9 }
 0x1a4   :  { %v607_v14 = vmin.f32 %v220_v11, 16.0  ;;  %v180_v15 = vmul.f32 %v605_v12, %v605_v12 }
 0x1a6   :  { %v222_v17 = vmul.f32 2.1237322e-06, %v607_v14  ;;  %v181_v18 = vmin.f32 %v180_v15, 16.0  ;;  %v233_v19 = vmul.f32 3.8918573e-05, %v607_v14 }
 0x1a8   :  { %v223_v21 = vadd.f32 0.00028619796, %v222_v17  ;;  %v182_v22 = vmul.f32 2.1237322e-06, %v181_v18  ;;  %v234_v23 = vadd.f32 0.001143296, %v233_v19 }
 0x1a9   :  { %v193_v25 = vmul.f32 3.8918573e-05, %v181_v18 }
 0x1aa   :  { %v224_v26 = vmul.f32 %v223_v21, %v607_v14  ;;  %v183_v27 = vadd.f32 0.00028619796, %v182_v22  ;;  %v235_v28 = vmul.f32 %v234_v23, %v607_v14 }
 0x1ab   :  { %v194_v30 = vadd.f32 0.001143296, %v193_v25 }
 0x1ac   :  { %v184_v31 = vmul.f32 %v183_v27, %v181_v18  ;;  %v236_v32 = vadd.f32 0.014752088, %v235_v28  ;;  %v225_v33 = vadd.f32 0.0036580483, %v224_v26 }
 0x1ad   :  { %v195_v35 = vmul.f32 %v194_v30, %v181_v18  ;;  %v177_v30 = vmul.f32 0.5, %v595_v5 }
 0x1ae   :  { %v237_v36 = vmul.f32 %v236_v32, %v607_v14  ;;  %v185_v37 = vadd.f32 0.0036580483, %v184_v31  ;;  %v226_v41 = vmul.f32 %v225_v33, %v607_v14  ;;  %v176_v33 = vmul.f32 0.5, %v600_v9 }
 0x1af   :  { %v196_v39 = vadd.f32 0.014752088, %v195_v35 }
 0x1b0   :  { %v238_v40 = vadd.f32 0.112945676, %v237_v36  ;;  %v186_v44 = vmul.f32 %v185_v37, %v181_v18  ;;  %v227_v47 = vadd.f32 0.05243302, %v226_v41 }
 0x1b1   :  { %v197_v42 = vmul.f32 %v196_v39, %v181_v18 }
 0x1b2   :  { %v239_v43 = vmul.f32 %v238_v40, %v607_v14  ;;  %v187_v50 = vadd.f32 0.05243302, %v186_v44  ;;  %v228_v53 = vmul.f32 %v227_v47, %v607_v14 }
 0x1b3   :  { %v198_v45 = vadd.f32 0.112945676, %v197_v42 }
 0x1b4   :  { %v240_v46 = vadd.f32 0.4994258, %v239_v43  ;;  %v188_v55 = vmul.f32 %v187_v50, %v181_v18  ;;  %v229_v57 = vadd.f32 0.18741608, %v228_v53 }
 0x1b5   :  { %v199_v48 = vmul.f32 %v198_v45, %v181_v18 }
 0x1b6   :  { %v241_v49 = vmul.f32 %v240_v46, %v607_v14  ;;  %v189_v58 = vadd.f32 0.18741608, %v188_v55  ;;  %v230_v60 = vmul.f32 %v229_v57, %v607_v14 }
 0x1b7   :  { %v200_v51 = vadd.f32 0.4994258, %v199_v48 }
 0x1b8   :  { %v242_v52 = vadd.f32 1.0, %v241_v49  ;;  %v190_v63 = vmul.f32 %v189_v58, %v181_v18  ;;  %v231_v6 = vadd.f32 1.1283791, %v230_v60 }
 0x1b9   :  { %v201_v54 = vmul.f32 %v200_v51, %v181_v18 }
 0x1ba   :  { %398 = vrcp.f32 %v242_v52  ;;  %v254_v3 = vand.u32 2147483648, %v242_v52  ;;  %v252_v10 = vand.u32 2147483647, %v242_v52  ;;  %v191_v13 = vadd.f32 1.1283791, %v190_v63 }
 0x1bb   :  { %v202_v56 = vadd.f32 1.0, %v201_v54  ;;  %vm248_vm8 = vweird.f32 %v242_v52  ;;  %v232_v20 = vmul.f32 %v231_v6, %v598_v8 }
 0x1bc   :  { %v255_v17 = vor.u32 1.1754944e-38, %v254_v3  ;;  %vm253_vm11 = vcmp.eq.f32.partialorder %v252_v10, 8.507059e+37  ;;  %v192_v25 = vmul.f32 %v191_v13, %v605_v12  ;;  %v393_v12 = vld [vmem:[%s640_s4] ss:$0 sm:$0xff] }
 0x1bd   :  { %400 = vrcp.f32 %v202_v56  ;;  %v214_v16 = vand.u32 2147483648, %v202_v56  ;;  %v212_v14 = vand.u32 2147483647, %v202_v56  ;;  %vm208_vm12 = vweird.f32 %v202_v56 }
 0x1be   :  { %v313_v36 = vadd.f32 %v393_v12, %v571_v1  ;;  %v314_v38 = vadd.f32 %v393_v12, %v568_v0 }
 0x1bf   :  { %v215_v24 = vor.u32 1.1754944e-38, %v214_v16  ;;  %vm213_vm14 = vcmp.eq.f32.partialorder %v212_v14, 8.507059e+37 }
 0x1c0   :  { %v399_v59 = vpop.eup %398 }
 0x1c1   :  { %v244_v61 = vmul.f32 %v399_v59, %v242_v52  ;;  %vm249_vm7 = vweird.f32 %v399_v59 }
 0x1c2   :  { %vm250_vm9 = vmor %vm248_vm8, %vm249_vm7 }
 0x1c3   :  { %v401_v62 = vpop.eup %400  ;;  %v245_v2 = vsub.f32 1.0, %v244_v61 }
 0x1c4   :  { %v204_v4 = vmul.f32 %v401_v62, %v202_v56  ;;  %vm209_vm10 = vweird.f32 %v401_v62 }
 0x1c5   :  { %v246_v7 = vmul.f32 %v399_v59, %v245_v2  ;;  %vm210_vm13 = vmor %vm208_vm12, %vm209_vm10 }
 0x1c6   :  { %v205_v11 = vsub.f32 1.0, %v204_v4 }
 0x1c7   :  { %v247_v15 = vadd.f32 %v399_v59, %v246_v7 }
 0x1c8   :  { %v206_v19 = vmul.f32 %v401_v62, %v205_v11 }
 0x1c9   :  { %v251_v18 = vsel %vm250_vm9, %v399_v59, %v247_v15 }
 0x1ca   :  { %v256_v21 = vsel %vm253_vm11, %v255_v17, %v251_v18  ;;  %v207_v22 = vadd.f32 %v401_v62, %v206_v19 }
 0x1cb   :  { %v257_v23 = vmul.f32 %v256_v21, %v232_v20 }
 0x1cc   :  { %v211_v26 = vsel %vm210_vm13, %v401_v62, %v207_v22 }
 0x1cd   :  { %v351_v27 = vclamps-f32 %v257_v23, 1.0  ;;  %v216_v28 = vsel %vm213_vm14, %v215_v24, %v211_v26 }
 0x1ce   :  { %v217_v29 = vmul.f32 %v216_v28, %v192_v25 }
 0x1cf   :  { %v261_v31 = vadd.f32 1.0, %v351_v27 }
 0x1d0   :  { %v350_v32 = vclamps-f32 %v217_v29, 1.0 }
 0x1d1   :  { %v263_v8 = vmul.f32 %v261_v31, %v177_v30 }
 0x1d2   :  { %v260_v34 = vadd.f32 1.0, %v350_v32 }
 0x1d3   :  { %299 = vmatmul.f32.vlgmr.msra.gmra.mxu3 %v263_v8 }
 0x1d4   :  { %v262_v35 = vmul.f32 %v260_v34, %v176_v33 }
 0x1d6   :  { %296 = vmatmul.f32.vlgmr.msra.gmra.mxu1 %v262_v35 }
 0x253   :  { %v297_v37 = vpop.f32.mrf.mxu1 }
 0x254   :  { %v319_v39 = vadd.f32 %v313_v36, %v297_v37 }
 0x256   :  { %328 = vst [vmem:[#allocation9] sm:$0xff] %v319_v39  ;;  %v300_v5 = vpop.f32.mrf.mxu3 }
 0x257   :  { %v320_v9 = vadd.f32 %v314_v38, %v300_v5 }
 0x259   :  { %329 = vst [vmem:[#allocation9 + $0x8] sm:$0xff] %v320_v9 }
 0x25a   :  { %342 = dma.vmem_to_hbm [thread:$0]  %s335_s21, 256, %s337_s24, [#allocation5], %s505_s9, %s505_s9, %s506_s10  }
 0x25b   :  { %502 = dma.done.wait [#allocation5], 256  }
 0x25c   :  { %503 = vsyncadd [#allocation5], 4294967040 }
 0x25d   :  { %347 = vsyncpa [#allocation4], 1 }
 0x25e   :  { %348 = vsyncpa [#allocation7], 1 }
 0x25f   :  { %349 = vsyncpa [#allocation5], 1 }

</bundles_post_ra>
